<compile_context>
chip_gen: v7x
topology: tpu7x:2x2x1
jax: 0.10.0
libtpu: 0.0.40
codegen_flags: <defaults>
</compile_context>

<pallas_src>
import functools

import jax
import jax.numpy as jnp
import numpy as np
from jax import lax
from jax.experimental import pallas as pl
from jax.experimental.pallas import tpu as pltpu


def _feature_decoder_kernel(e_ref, zz_ref, wcat_ref, bcat_ref, wms_ref, bms_ref,
                            ymu_ref, ysig_ref, *, n_assets):
    # e_ref    : (bt*N, D)  features, native row-major (row j -> item j//N, asset j%N)
    # zz_ref   : (2K, B)    column b = [Z_mu[b]; Z_sigma[b]^2]  (full batch, tiny)
    # wcat_ref : (2K, D)    rows 0..K-1 = w_l^T, rows K..2K-1 = w_beta^T
    # bcat_ref : (2K, 1)    matching per-channel biases
    # wms_ref  : (2, K)     row 0 = w_mu, row 1 = w_sigma
    # bms_ref  : (2, 1)     [b_mu; b_sigma]
    # ymu_ref / ysig_ref : (1, bt*N) lane-flat outputs
    f32 = jnp.float32
    btn = e_ref.shape[0]
    bt = btn // n_assets
    k = wms_ref.shape[1]
    b_total = zz_ref.shape[1]

    # ---- Stage 1: fused hidden + beta loading, one wide MXU op. -------------
    # Contract D on the LAST axis of both operands (e stays in native layout).
    hw = lax.dot_general(wcat_ref[...], e_ref[...], (((1,), (1,)), ((), ())),
                         preferred_element_type=f32)                  # (2K, bt*N)
    hw = hw + bcat_ref[...]                                           # lane bcast
    h_pre = hw[:k, :]
    h = jnp.where(h_pre > 0, h_pre, 0.2 * h_pre)                      # leaky_relu(0.2)
    beta = hw[k:, :]                                                  # (K, bt*N)

    # ---- Stage 2a: mu / sigma heads, one tiny MXU op for both. -------------
    ms = jnp.dot(wms_ref[...], h.astype(wms_ref.dtype),
                 preferred_element_type=f32) + bms_ref[...]           # (2, bt*N)
    alpha_mu = ms[0:1, :]
    s_pre = ms[1:2, :]
    # numerically stable softplus (log1p form; EUP work, free slot)
    alpha_sigma = jnp.maximum(s_pre, 0.0) + jnp.log1p(jnp.exp(-jnp.abs(s_pre)))

    # ---- Stage 2b: per-item factor contraction. ------------------------------
    # Expand [Z_mu; Z_sigma^2] across each item's N lanes with an iota-built
    # selection matrix (no extra HBM traffic, no zero-padded contraction),
    # then reduce over K on the sublane axis (idle XLU).
    j_loc = lax.broadcasted_iota(jnp.int32, (b_total, btn), 1)
    b_row = lax.broadcasted_iota(jnp.int32, (b_total, btn), 0)
    start = (b_row - pl.program_id(0) * bt) * n_assets
    sel = jnp.logical_and(j_loc >= start, j_loc < start + n_assets).astype(f32)
    zz_exp = jnp.dot(zz_ref[...], sel, preferred_element_type=f32)    # (2K, bt*N)

    mu_z = jnp.sum(beta * zz_exp[:k, :], axis=0, keepdims=True)           # (1, bt*N)
    var_z = jnp.sum(beta * beta * zz_exp[k:, :], axis=0, keepdims=True)   # (1, bt*N)

    # ---- Lane-dense stores. ---------------------------------------------------
    ymu_ref[...] = alpha_mu + mu_z
    ysig_ref[...] = jnp.sqrt(alpha_sigma * alpha_sigma + var_z)


def _pick_batch_tile(B, N, D):
    """Largest batch tile that fits a conservative per-step VMEM budget.

    Budgeted for the smallest generation (v7x: 64 MiB physical / 32 MiB default
    scoped VMEM), leaving headroom for double-buffered blocks.
    """
    budget = 8 * 1024 * 1024                        # bytes
    bytes_per_item = (N * D + 2 * N) * 4 * 2        # e block + 2 outputs, x2 buffers
    cap = max(1, budget // bytes_per_item)
    if B <= cap:
        return B                                    # whole batch in one grid step
    # >1 grid step: keep every block shape legal & lane-dense -> bt*N % 128 == 0.
    for bt in range(min(B, cap), 0, -1):
        if B % bt == 0 and (bt * N) % 128 == 0:
            return bt
    return B  # fallback: one large step rather than an illegal block shape


def feature_decoder_pallas(e, z_mu, z_sigma, params, *, mxu_dtype=jnp.float32):
    B, N, D = e.shape
    K = params["w_l"].shape[1]
    f32 = jnp.float32

    # ---- layout plumbing / parameter packing (all tiny or free) --------------
    # Free contiguous reshape; no HBM transpose of e.
    e_flat = e.reshape(B * N, D).astype(mxu_dtype)                          # (B*N, D)

    w_cat = jnp.concatenate([params["w_l"], params["w_beta"]], axis=1).T \
              .astype(mxu_dtype)                                            # (2K, D)
    b_cat = jnp.concatenate([params["b_l"], params["b_beta"]], axis=1).T \
              .astype(f32)                                                  # (2K, 1)
    w_ms = jnp.concatenate([params["w_mu"], params["w_sigma"]], axis=0) \
              .astype(mxu_dtype)                                            # (2, K)
    b_ms = jnp.concatenate([params["b_mu"], params["b_sigma"]], axis=0) \
              .astype(f32)                                                  # (2, 1)

    # Per-item factor stats, packed & transposed (tiny; no zero padding).
    zz_t = jnp.concatenate([z_mu, z_sigma * z_sigma], axis=1).T.astype(f32)  # (2K, B)

    bt = _pick_batch_tile(B, N, D)
    grid = (B // bt,)
    btn = bt * N
    two_k = 2 * K

    def const_spec(shape):
        return pl.BlockSpec(shape, lambda g: (0, 0))

    kernel = functools.partial(_feature_decoder_kernel, n_assets=N)

    # NOTE: at demo size the whole batch is one grid step, so v7x's second
    # TensorCore idles; at production B the "parallel" batch-tile axis has
    # multiple steps and shards across both cores.
    y_mu_flat, y_sig_flat = pl.pallas_call(
        kernel,
        out_shape=(jax.ShapeDtypeStruct((1, B * N), f32),
                   jax.ShapeDtypeStruct((1, B * N), f32)),
        grid=grid,
        in_specs=[
            pl.BlockSpec((btn, D), lambda g: (g, 0)),   # e (native layout, flat rows)
            const_spec((two_k, B)),                     # packed [Z_mu; Z_sigma^2]
            const_spec((two_k, D)),                     # fused weights
            const_spec((two_k, 1)),                     # fused biases
            const_spec((2, K)),                         # [w_mu; w_sigma]
            const_spec((2, 1)),                         # [b_mu; b_sigma]
        ],
        out_specs=(
            pl.BlockSpec((1, btn), lambda g: (0, g)),   # y_mu   (lane-flat)
            pl.BlockSpec((1, btn), lambda g: (0, g)),   # y_sigma (lane-flat)
        ),
        compiler_params=pltpu.CompilerParams(
            dimension_semantics=("parallel",),
            vmem_limit_bytes=32 * 1024 * 1024),
    )(e_flat, zz_t, w_cat, b_cat, w_ms, b_ms)

    # Free row-major reshapes back to the module's (B, N) outputs.
    return y_mu_flat.reshape(B, N), y_sig_flat.reshape(B, N)


def feature_decoder_reference(e, z_mu, z_sigma, p):
    """Pure-JAX reference mirroring the PyTorch forward."""
    h = jax.nn.leaky_relu(e @ p["w_l"] + p["b_l"][0], 0.2)                  # (B, N, K)
    alpha_mu = jnp.sum(h * p["w_mu"][0], axis=-1) + p["b_mu"][0, 0]         # (B, N)
    alpha_sigma = jax.nn.softplus(
        jnp.sum(h * p["w_sigma"][0], axis=-1) + p["b_sigma"][0, 0])         # (B, N)
    beta_load = e @ p["w_beta"] + p["b_beta"][0]                            # (B, N, K)
    y_mu = alpha_mu + jnp.sum(beta_load * z_mu[:, None, :], axis=2)
    y_sigma = jnp.sqrt(alpha_sigma ** 2 +
                       jnp.sum(beta_load ** 2 * z_sigma[:, None, :] ** 2, axis=2))
    return y_mu, y_sigma


def init_params(key, input_dim, output_dim):
    ks = jax.random.split(key, 8)
    s_in = 1.0 / np.sqrt(input_dim)
    s_hid = 1.0 / np.sqrt(output_dim)
    return {
        "w_l":     jax.random.uniform(ks[0], (input_dim, output_dim), jnp.float32, -s_in, s_in),
        "b_l":     jax.random.uniform(ks[1], (1, output_dim), jnp.float32, -s_in, s_in),
        "w_mu":    jax.random.uniform(ks[2], (1, output_dim), jnp.float32, -s_hid, s_hid),
        "b_mu":    jax.random.uniform(ks[3], (1, 1), jnp.float32, -s_hid, s_hid),
        "w_sigma": jax.random.uniform(ks[4], (1, output_dim), jnp.float32, -s_hid, s_hid),
        "b_sigma": jax.random.uniform(ks[5], (1, 1), jnp.float32, -s_hid, s_hid),
        "w_beta":  jax.random.uniform(ks[6], (input_dim, output_dim), jnp.float32, -s_in, s_in),
        "b_beta":  jax.random.uniform(ks[7], (1, output_dim), jnp.float32, -s_in, s_in),
    }


if __name__ == "__main__":
    B, N, D, K = 2, 16, 32, 8      # batch, assets, input_dim, output_dim (= num factors)

    key = jax.random.PRNGKey(0)
    k_e, k_zmu, k_zsig, k_p = jax.random.split(key, 4)
    e = jax.random.normal(k_e, (B, N, D), jnp.float32)
    z_mu = jax.random.normal(k_zmu, (B, K), jnp.float32)
    z_sigma = jax.nn.softplus(jax.random.normal(k_zsig, (B, K), jnp.float32))
    params = init_params(k_p, D, K)

    y_mu_ref, y_sigma_ref = feature_decoder_reference(e, z_mu, z_sigma, params)

    # f32 MXU path (matches the PyTorch module numerics).
    y_mu, y_sigma = feature_decoder_pallas(e, z_mu, z_sigma, params)
    jax.block_until_ready((y_mu, y_sigma))
    np.testing.assert_allclose(np.asarray(y_mu), np.asarray(y_mu_ref), rtol=1e-5, atol=1e-5)
    np.testing.assert_allclose(np.asarray(y_sigma), np.asarray(y_sigma_ref), rtol=1e-5, atol=1e-5)

    # bf16 MXU-operand path (v6e/v7x guidance): f32 accumulation, f32 activations.
    y_mu_bf, y_sigma_bf = feature_decoder_pallas(e, z_mu, z_sigma, params,
                                                 mxu_dtype=jnp.bfloat16)
    jax.block_until_ready((y_mu_bf, y_sigma_bf))
    np.testing.assert_allclose(np.asarray(y_mu_bf), np.asarray(y_mu_ref), rtol=5e-2, atol=5e-2)
    np.testing.assert_allclose(np.asarray(y_sigma_bf), np.asarray(y_sigma_ref), rtol=5e-2, atol=5e-2)

    print("KERNEL_OK")
</pallas_src>

<mosaic_0001>
module attributes {stable_mosaic.version = 11 : i64} {
  func.func @_feature_decoder_kernel(%arg0: i32, %arg1: memref<32x32xf32, #tpu.memory_space<vmem>>, %arg2: memref<16x2xf32, #tpu.memory_space<vmem>>, %arg3: memref<16x32xf32, #tpu.memory_space<vmem>>, %arg4: memref<16x1xf32, #tpu.memory_space<vmem>>, %arg5: memref<2x8xf32, #tpu.memory_space<vmem>>, %arg6: memref<2x1xf32, #tpu.memory_space<vmem>>, %arg7: memref<1x32xf32, #tpu.memory_space<vmem>>, %arg8: memref<1x32xf32, #tpu.memory_space<vmem>>) attributes {dimension_semantics = [#tpu.dimension_semantics<parallel>], iteration_bounds = array<i64: 1>, scalar_prefetch = 0 : i64, scratch_operands = 0 : i64, tpu.core_type = #tpu.core_type<tc>, window_params = [{transform_indices = @transform_0, window_bounds = array<i64: 32, 32>}, {pipeline_mode = #tpu.pipeline_mode<synchronous>, transform_indices = @transform_1, window_bounds = array<i64: 16, 2>}, {pipeline_mode = #tpu.pipeline_mode<synchronous>, transform_indices = @transform_2, window_bounds = array<i64: 16, 32>}, {pipeline_mode = #tpu.pipeline_mode<synchronous>, transform_indices = @transform_3, window_bounds = array<i64: 16, 1>}, {pipeline_mode = #tpu.pipeline_mode<synchronous>, transform_indices = @transform_4, window_bounds = array<i64: 2, 8>}, {pipeline_mode = #tpu.pipeline_mode<synchronous>, transform_indices = @transform_5, window_bounds = array<i64: 2, 1>}, {transform_indices = @transform_6, window_bounds = array<i64: 1, 32>}, {transform_indices = @transform_7, window_bounds = array<i64: 1, 32>}]} {
    %c0 = arith.constant 0 : index
    %c0_0 = arith.constant 0 : index
    %0 = vector.load %arg3[%c0, %c0_0] : memref<16x32xf32, #tpu.memory_space<vmem>>, vector<16x32xf32>
    %c0_1 = arith.constant 0 : index
    %c0_2 = arith.constant 0 : index
    %1 = vector.load %arg1[%c0_1, %c0_2] : memref<32x32xf32, #tpu.memory_space<vmem>>, vector<32x32xf32>
    %cst = arith.constant dense<0.000000e+00> : vector<16x32xf32>
    %2 = tpu.matmul %0, %1, %cst {dimension_numbers = #tpu.dot_dimension_numbers<[1], [1], [0], [0], [0, 0, 1, 0], [], []>} : vector<16x32xf32>, vector<32x32xf32>, vector<16x32xf32> -> vector<16x32xf32>
    %c0_3 = arith.constant 0 : index
    %c0_4 = arith.constant 0 : index
    %3 = vector.load %arg4[%c0_3, %c0_4] : memref<16x1xf32, #tpu.memory_space<vmem>>, vector<16x1xf32>
    %4 = vector.broadcast %3 : vector<16x1xf32> to vector<16x32xf32>
    %5 = arith.addf %2, %4 : vector<16x32xf32>
    %6 = vector.extract_strided_slice %5 {offsets = [0, 0], sizes = [8, 32], strides = [1, 1]} : vector<16x32xf32> to vector<8x32xf32>
    %cst_5 = arith.constant 0.000000e+00 : f32
    %7 = vector.broadcast %cst_5 : f32 to vector<8x32xf32>
    %8 = arith.cmpf ogt, %6, %7 : vector<8x32xf32>
    %cst_6 = arith.constant 2.000000e-01 : f32
    %9 = vector.broadcast %cst_6 : f32 to vector<8x32xf32>
    %10 = arith.mulf %9, %6 : vector<8x32xf32>
    %11 = arith.select %8, %6, %10 : vector<8x32xi1>, vector<8x32xf32>
    %12 = vector.extract_strided_slice %5 {offsets = [8, 0], sizes = [8, 32], strides = [1, 1]} : vector<16x32xf32> to vector<8x32xf32>
    %c0_7 = arith.constant 0 : index
    %c0_8 = arith.constant 0 : index
    %13 = vector.load %arg5[%c0_7, %c0_8] : memref<2x8xf32, #tpu.memory_space<vmem>>, vector<2x8xf32>
    %cst_9 = arith.constant dense<0.000000e+00> : vector<2x32xf32>
    %14 = tpu.matmul %13, %11, %cst_9 {dimension_numbers = #tpu.dot_dimension_numbers<[1], [0], [0], [1], [0, 0, 1, 1], [], []>} : vector<2x8xf32>, vector<8x32xf32>, vector<2x32xf32> -> vector<2x32xf32>
    %c0_10 = arith.constant 0 : index
    %c0_11 = arith.constant 0 : index
    %15 = vector.load %arg6[%c0_10, %c0_11] : memref<2x1xf32, #tpu.memory_space<vmem>>, vector<2x1xf32>
    %16 = vector.broadcast %15 : vector<2x1xf32> to vector<2x32xf32>
    %17 = arith.addf %14, %16 : vector<2x32xf32>
    %18 = vector.extract_strided_slice %17 {offsets = [0, 0], sizes = [1, 32], strides = [1, 1]} : vector<2x32xf32> to vector<1x32xf32>
    %19 = vector.extract_strided_slice %17 {offsets = [1, 0], sizes = [1, 32], strides = [1, 1]} : vector<2x32xf32> to vector<1x32xf32>
    %cst_12 = arith.constant 0.000000e+00 : f32
    %20 = vector.broadcast %cst_12 : f32 to vector<1x32xf32>
    %21 = arith.maximumf %19, %20 : vector<1x32xf32>
    %22 = math.absf %19 : vector<1x32xf32>
    %cst_13 = arith.constant 0.000000e+00 : f32
    %23 = vector.broadcast %cst_13 : f32 to vector<1x32xf32>
    %24 = arith.subf %23, %22 : vector<1x32xf32>
    %25 = math.exp %24 : vector<1x32xf32>
    %26 = math.log1p %25 : vector<1x32xf32>
    %27 = arith.addf %21, %26 : vector<1x32xf32>
    %28 = tpu.iota {dimensions = array<i32: 1>} : vector<2x32xi32>
    %29 = tpu.iota {dimensions = array<i32: 0>} : vector<2x32xi32>
    %c2_i32 = arith.constant 2 : i32
    %30 = arith.muli %arg0, %c2_i32 : i32
    %31 = vector.broadcast %30 : i32 to vector<2x32xi32>
    %32 = arith.subi %29, %31 : vector<2x32xi32>
    %c16_i32 = arith.constant 16 : i32
    %33 = vector.broadcast %c16_i32 : i32 to vector<2x32xi32>
    %34 = arith.muli %32, %33 : vector<2x32xi32>
    %35 = arith.cmpi sge, %28, %34 : vector<2x32xi32>
    %c16_i32_14 = arith.constant 16 : i32
    %36 = vector.broadcast %c16_i32_14 : i32 to vector<2x32xi32>
    %37 = arith.addi %34, %36 : vector<2x32xi32>
    %38 = arith.cmpi slt, %28, %37 : vector<2x32xi32>
    %39 = arith.andi %35, %38 : vector<2x32xi1>
    %40 = arith.extui %39 : vector<2x32xi1> to vector<2x32xi32>
    %41 = arith.sitofp %40 : vector<2x32xi32> to vector<2x32xf32>
    %c0_15 = arith.constant 0 : index
    %c0_16 = arith.constant 0 : index
    %42 = vector.load %arg2[%c0_15, %c0_16] : memref<16x2xf32, #tpu.memory_space<vmem>>, vector<16x2xf32>
    %cst_17 = arith.constant dense<0.000000e+00> : vector<16x32xf32>
    %43 = tpu.matmul %42, %41, %cst_17 {dimension_numbers = #tpu.dot_dimension_numbers<[1], [0], [0], [1], [0, 0, 1, 1], [], []>} : vector<16x2xf32>, vector<2x32xf32>, vector<16x32xf32> -> vector<16x32xf32>
    %44 = vector.extract_strided_slice %43 {offsets = [0, 0], sizes = [8, 32], strides = [1, 1]} : vector<16x32xf32> to vector<8x32xf32>
    %45 = arith.mulf %12, %44 : vector<8x32xf32>
    %cst_18 = arith.constant dense<0.000000e+00> : vector<32xf32>
    %46 = vector.multi_reduction <add>, %45, %cst_18 [0] : vector<8x32xf32> to vector<32xf32>
    %47 = vector.shape_cast %46 : vector<32xf32> to vector<1x32xf32>
    %48 = arith.mulf %12, %12 : vector<8x32xf32>
    %49 = vector.extract_strided_slice %43 {offsets = [8, 0], sizes = [8, 32], strides = [1, 1]} : vector<16x32xf32> to vector<8x32xf32>
    %50 = arith.mulf %48, %49 : vector<8x32xf32>
    %cst_19 = arith.constant dense<0.000000e+00> : vector<32xf32>
    %51 = vector.multi_reduction <add>, %50, %cst_19 [0] : vector<8x32xf32> to vector<32xf32>
    %52 = vector.shape_cast %51 : vector<32xf32> to vector<1x32xf32>
    %53 = arith.addf %18, %47 : vector<1x32xf32>
    %c0_20 = arith.constant 0 : index
    %c0_21 = arith.constant 0 : index
    %54 = vector.load %arg7[%c0_20, %c0_21] : memref<1x32xf32, #tpu.memory_space<vmem>>, vector<1x32xf32>
    tpu.vector_store %arg7[%c0_20, %c0_21], %53 {strides = array<i32>} : memref<1x32xf32, #tpu.memory_space<vmem>>, vector<1x32xf32>,
    %55 = arith.mulf %27, %27 : vector<1x32xf32>
    %56 = arith.addf %55, %52 : vector<1x32xf32>
    %57 = math.sqrt %56 : vector<1x32xf32>
    %c0_22 = arith.constant 0 : index
    %c0_23 = arith.constant 0 : index
    %58 = vector.load %arg8[%c0_22, %c0_23] : memref<1x32xf32, #tpu.memory_space<vmem>>, vector<1x32xf32>
    tpu.vector_store %arg8[%c0_22, %c0_23], %57 {strides = array<i32>} : memref<1x32xf32, #tpu.memory_space<vmem>>, vector<1x32xf32>,
    return
  }
  func.func @transform_0(%arg0: i32) -> (i32, i32) {
    %c0_i32 = arith.constant 0 : i32
    %c0_i32_0 = arith.constant 0 : i32
    return %arg0, %c0_i32 : i32, i32
  }
  func.func @transform_1(%arg0: i32) -> (i32, i32) {
    %c0_i32 = arith.constant 0 : i32
    %c0_i32_0 = arith.constant 0 : i32
    %c0_i32_1 = arith.constant 0 : i32
    return %c0_i32, %c0_i32_0 : i32, i32
  }
  func.func @transform_2(%arg0: i32) -> (i32, i32) {
    %c0_i32 = arith.constant 0 : i32
    %c0_i32_0 = arith.constant 0 : i32
    %c0_i32_1 = arith.constant 0 : i32
    return %c0_i32, %c0_i32_0 : i32, i32
  }
  func.func @transform_3(%arg0: i32) -> (i32, i32) {
    %c0_i32 = arith.constant 0 : i32
    %c0_i32_0 = arith.constant 0 : i32
    %c0_i32_1 = arith.constant 0 : i32
    return %c0_i32, %c0_i32_0 : i32, i32
  }
  func.func @transform_4(%arg0: i32) -> (i32, i32) {
    %c0_i32 = arith.constant 0 : i32
    %c0_i32_0 = arith.constant 0 : i32
    %c0_i32_1 = arith.constant 0 : i32
    return %c0_i32, %c0_i32_0 : i32, i32
  }
  func.func @transform_5(%arg0: i32) -> (i32, i32) {
    %c0_i32 = arith.constant 0 : i32
    %c0_i32_0 = arith.constant 0 : i32
    %c0_i32_1 = arith.constant 0 : i32
    return %c0_i32, %c0_i32_0 : i32, i32
  }
  func.func @transform_6(%arg0: i32) -> (i32, i32) {
    %c0_i32 = arith.constant 0 : i32
    %c0_i32_0 = arith.constant 0 : i32
    return %c0_i32, %arg0 : i32, i32
  }
  func.func @transform_7(%arg0: i32) -> (i32, i32) {
    %c0_i32 = arith.constant 0 : i32
    %c0_i32_0 = arith.constant 0 : i32
    return %c0_i32, %arg0 : i32, i32
  }
}

</mosaic_0001>

<bundles_post_ra>
// kernel: tpu_custom_call.1
= control target key start
LH: loop header
LB: loop body
LE: loop exit
PB: predicated region body
PF: predicated region fallthrough
CT: control target
= control target key end

     0   :  { %13 = vsyncpa [#allocation3], 0  ;;  %s689_s0 = inlined_call_operand.vmem [shape: f32[32,32], index: 0, kind: input, shape index: {}]   ;;  %s690_s1 = inlined_call_operand.vmem [shape: f32[16,2], index: 1, kind: input, shape index: {}]   ;;  %s691_s2 = inlined_call_operand.hbm [shape: f32[16,32], index: 2, kind: input, shape index: {}]   ;;  %s692_s3 = inlined_call_operand.vmem [shape: f32[16,1], index: 3, kind: input, shape index: {}]   ;;  %s693_s4 = inlined_call_operand.vmem [shape: f32[2,8], index: 4, kind: input, shape index: {}]   ;;  %s694_s5 = inlined_call_operand.vmem [shape: f32[2,1], index: 5, kind: input, shape index: {}]   ;;  %s695_s6 = inlined_call_operand.hbm [shape: f32[1,32], index: 6, kind: output, shape index: {0}]   ;;  %s696_s7 = inlined_call_operand.hbm [shape: f32[1,32], index: 7, kind: output, shape index: {1}]  }
   0x1   :  { %14 = vsyncpa [#allocation4], 0 }
   0x2   :  { %15 = vsyncpa [#allocation7], 0  ;;  %s557_s24 = smov [#allocation2]   ;;  %s485_s28 = scalar_lea.hbm %s691_s2, 256 }
   0x3   :  { %s25_s25 = sshll.u32 %s557_s24, 4  ;;  %p486_p0 = scmp.ne.s32.totalorder %s691_s2, %s485_s28  ;;  %s26_s25 = int_to_ptr.vmem [resolvable:$true] %s25_s25 }
   0x4   :  { %p489_p1 = scmp.lt.u32.totalorder %s485_s28, %s691_s2 }
   0x6   :  { %p491_p2 = pnand %p489_p1, %p486_p0 }
   0x8   :  { %494 = shalt.err (!%p491_p2)
}
   0x9   :  { %s495_s10 = scalar_lea.vmem %s26_s25, 256  ;;  %p500_p4 = scmp.lt.s32.totalorder %s26_s25, %s26_s25 }
   0xa   :  { %p496_p3 = scmp.ne.s32.totalorder %s26_s25, %s495_s10  ;;  %p501_p5 = scmp.lt.s32.totalorder %s495_s10, %s495_s10 }
   0xc   :  { %p502_p6 = por %p501_p5, %p500_p4 }
   0xe   :  { %p503_p7 = pnand %p502_p6, %p496_p3 }
  0x10   :  { %506 = shalt.err (!%p503_p7)
}
  0x11   :  { %s558_s11 = smov 128   ;;  %s559_s12 = smov 8  }
  0x12   :  { %31 = dma.hbm_to_vmem [thread:$0]  %s691_s2, 256, %s26_s25, [#allocation3], %s558_s11, %s558_s11, %s559_s12  }
  0x13   :  { %551 = dma.done.wait [#allocation3], 256  }
  0x14   :  { %552 = vsyncadd [#allocation3], 4294967040  ;;  %v560_v0 = vmov 0   ;;  %vm59_vm0 = vcmask 261120   ;;  %v43_v2 = vld [vmem:[%s689_s0] sm:$0xff]  ;;  %v44_v3 = vld [vmem:[%s689_s0 + $0x8] sm:$0xff]  ;;  %v252_v14 = vlaneseq }
  0x15   :  { %477 = vset.pattern.permute.xlu0 %v560_v0  ;;  %478 = vset.pattern.permute.xlu1 %v560_v0  ;;  %vm619_vm1 = vmpackc.low %vm59_vm0, %vm59_vm0  ;;  %v45_v4 = vld [vmem:[%s689_s0 + $0x10] sm:$0xff]  ;;  %v457_v5 = vpack.c.bf16 %v44_v3, %v43_v2  ;;  %v46_v6 = vld [vmem:[%s689_s0 + $0x18] sm:$0xff]  ;;  %v561_v13 = vmov 0.0   ;;  %vm562_vm2 = vmmov 0   ;;  %vm163_vm7 = vcmask 64512  }
  0x16   :  { %v41_v7 = vld [vmem:[#allocation2] sm:$0xff]  ;;  %v463_v8 = vpack.c.bf16 %v46_v6, %v45_v4  ;;  %v48_v10 = vld [vmem:[%s692_s3 + $0x8] sm:$0xff]  ;;  %447 = vmatprep.subr.mxu1 %v561_v13  ;;  %449 = vmatprep.mubr.msk.f32.mxu1 %vm562_vm2, %v561_v13  ;;  %v255_v15 = vshrl.u32 %v252_v14, 7  ;;  %v253_v17 = vand.u32 127, %v252_v14  ;;  %vm275_vm8 = vcmask 1041408  }
  0x17   :  { %444 = vmatprep.mubr.msk.f32.mxu0 %vm59_vm0, %v41_v7  ;;  %v47_v9 = vld [vmem:[%s692_s3] sm:$0xff]  ;;  %459 = vmatprep.subr.msk.bf16.mxu0 %vm619_vm1, %v457_v5  ;;  %v42_v12 = vld [vmem:[#allocation2 + $0x8] sm:$0xff]  ;;  %vm268_vm9 = vcmask 15360   ;;  %vm372_vm10 = vcmask 253952  }
  0x18   :  { %51 = vperm.xlu0 %477, %v47_v9   ;;  %462 = vmatpush3.bf16.xpose.msk.msra.mxu0 %vm619_vm1, %v457_v5  ;;  %v157_v11 = vld [vmem:[%s694_s5] sm:$0x3]  ;;  %v259_v16 = vmul.u32 16, %v255_v15  ;;  %v267_v28 = vld [vmem:[%s690_s1 + $0x8] sm:$0xff] }
  0x19   :  { %56 = vperm.xlu1 %478, %v48_v10   ;;  %465 = vmatprep.subr.msk.bf16.mxu0 %vm619_vm1, %v463_v8  ;;  %v156_v24 = vld [vmem:[%s693_s4] sm:$0x3] }
  0x1a   :  { %v261_v18 = vadd.s32 16, %v259_v16  ;;  %vm260_vm3 = vcmp.ge.s32.totalorder %v253_v17, %v259_v16  ;;  %v266_v27 = vld [vmem:[%s690_s1] sm:$0xff]  ;;  %s563_s1 = smov [#allocation5]  }
  0x1b   :  { %s391_s4 = sshll.u32 %s563_s1, 4  ;;  %s392_s4 = int_to_ptr.vmem [resolvable:$true] %s391_s4 }
  0x1c   :  { %160 = vperm.xlu0 %477, %v157_v11   ;;  %vm262_vm4 = vcmp.lt.s32.totalorder %v253_v17, %v261_v18  ;;  %s507_s8 = scalar_lea.vmem %s392_s4, 16  ;;  %s511_s9 = scalar_lea.vmem %s392_s4, 32 }
  0x1d   :  { %vm263_vm5 = vmand %vm260_vm3, %vm262_vm4  ;;  %p508_p8 = scmp.ne.s32.totalorder %s392_s4, %s507_s8  ;;  %p512_p9 = scmp.lt.s32.totalorder %s392_s4, %s392_s4 }
  0x1e   :  { %v421_v25 = vsel %vm263_vm5, 1.0, %v561_v13  ;;  %p513_p10 = scmp.lt.s32.totalorder %s511_s9, %s507_s8 }
  0x20   :  { %468 = vmatpush3.bf16.xpose.msk.msra.mxu0 %vm619_vm1, %v463_v8  ;;  %p514_p11 = por %p513_p10, %p512_p9 }
  0x22   :  { %p515_p12 = pnand %p514_p11, %p508_p8 }
  0x27   :  { %445 = vmatmul.mubr.msk.f32.vlgmr.msra.gmra.mrb[0].mxu0 %vm59_vm0, %v42_v12 }
  0x97   :  { %v52_v20 = vpop.permute.xlu0 %51 }
  0x98   :  { %v57_v29 = vpop.permute.xlu1 %56 }
  0x9b   :  { %v161_v31 = vpop.permute.xlu0 %160 }
  0xfa   :  { %v446_v19 = vpop.f32.mrb[0].mxu0 }
  0xfb   :  { %v144_v21 = vpop.f32.mrb[1].mxu0  ;;  %v150_v30 = vadd.f32 %v446_v19, %v57_v29 }
  0xfc   :  { %v145_v22 = vadd.f32 %v144_v21, %v52_v20 }
  0xfd   :  { %v362_v36 = vmul.f32 %v150_v30, %v150_v30 }
  0xfe   :  { %vm153_vm6 = vcmp.gt.f32.partialorder %v145_v22, 0.0  ;;  %v154_v23 = vmul.f32 0.2, %v145_v22 }
 0x100   :  { %v155_v26 = vsel %vm153_vm6, %v145_v22, %v154_v23 }
 0x101   :  { %448 = vmatpush3.msra.mxu1 %v155_v26 }
 0x102   :  { %450 = vmatmul.mubr.msk.f32.vlgmr.msra.gmra.mrb[0].mxu1 %vm163_vm7, %v156_v24  ;;  %452 = vmatprep.subr.msk.mxu1 %vm275_vm8, %v421_v25 }
 0x103   :  { %453 = vmatpush3.msk.msra.mxu1 %vm275_vm8, %v421_v25  ;;  %454 = vmatprep.mubr.msk.f32.mxu1 %vm268_vm9, %v266_v27 }
 0x106   :  { %455 = vmatmul.mubr.msk.f32.vlgmr.msra.gmra.mrb[2].mxu1 %vm268_vm9, %v267_v28 }
 0x1d5   :  { %v233_v32 = vpop.f32.mrb[0].mxu1 }
 0x1d6   :  { %v234_v33 = vadd.f32 %v233_v32, %v161_v31  ;;  %v451_v34 = vpop.f32.mrb[1].mxu1 }
 0x1d8   :  { %v238_v35 = vand.u32 2147483647, %v234_v33 }
 0x1d9   :  { %v456_v37 = vpop.f32.mrb[2].mxu1 }
 0x1da   :  { %v239_v38 = vsub.f32 0.0, %v238_v35  ;;  %v363_v39 = vmul.f32 %v456_v37, %v362_v36  ;;  %v345_v40 = vpop.f32.mrb[3].mxu1 }
 0x1db   :  { %v354_v41 = vmul.f32 %v345_v40, %v150_v30 }
 0x1dc   :  { %v240_v42 = vmul.f32 1.442695, %v239_v38  ;;  %v364_v47 = vsel %vm59_vm0, %v363_v39, 0.0 }
 0x1dd   :  { %v355_v43 = vsel %vm59_vm0, %v354_v41, 0.0  ;;  %v365_v50 = vrot.slane %v364_v47, 4 }
 0x1de   :  { %479 = vpow2.f32 %v240_v42  ;;  %v356_v44 = vrot.slane %v355_v43, 4 }
 0x1df   :  { %v366_v55 = vadd.f32 %v365_v50, %v364_v47 }
 0x1e0   :  { %v357_v45 = vadd.f32 %v356_v44, %v355_v43 }
 0x1e2   :  { %v358_v46 = vrot.slane %v357_v45, 2 }
 0x1e4   :  { %v359_v48 = vadd.f32 %v358_v46, %v357_v45 }
 0x1e6   :  { %v360_v49 = vrot.slane %v359_v48, 1 }
 0x1e8   :  { %v480_v51 = vpop.eup %479  ;;  %v361_v52 = vadd.f32 %v360_v49, %v359_v48 }
 0x1e9   :  { %v242_v53 = vadd.f32 1.0, %v480_v51 }
 0x1ea   :  { %v371_v54 = vadd.f32 %v361_v52, %v234_v33 }
 0x1eb   :  { %481 = vlog2.f32 %v242_v53 }
 0x1ec   :  { %373 = vst.msk [vmem:[#allocation5] sm:$0x1] %vm372_vm10, %v371_v54 }
 0x1ed   :  { %518 = shalt.err (!%p515_p12)
}
 0x1ee   :  { %s519_s12 = scalar_lea.hbm %s695_s6, 16 }
 0x1ef   :  { %p520_p13 = scmp.ne.s32.totalorder %s695_s6, %s519_s12  ;;  %p523_p0 = scmp.lt.u32.totalorder %s519_s12, %s695_s6 }
 0x1f1   :  { %p525_p1 = pnand %p523_p0, %p520_p13 }
 0x1f3   :  { %528 = shalt.err (!%p525_p1)
}
 0x1f4   :  { %394 = dma.vmem_to_hbm [thread:$0]  %s392_s4, 16, %s695_s6, [#allocation4]   ;;  %v245_v56 = vmul.f32 -0.5, %v480_v51  ;;  %v367_v57 = vrot.slane %v366_v55, 2  ;;  %v248_v59 = vand.u32 2147483647, %v480_v51 }
 0x1f5   :  { %v482_v61 = vpop.eup %481  ;;  %v237_v0 = vmax.f32 %v234_v33, 0.0  ;;  %s564_s2 = smov [#allocation6]   ;;  %vm383_vm13 = vcmask 254977  }
 0x1f6   :  { %v246_v58 = vadd.f32 1.0, %v245_v56  ;;  %v368_v60 = vadd.f32 %v367_v57, %v366_v55  ;;  %v244_v62 = vmul.f32 0.6931472, %v482_v61  ;;  %vm249_vm11 = vcmp.lt.f32.partialorder %v248_v59, 0.0004427343  ;;  %s401_s6 = sshll.u32 %s564_s2, 4  ;;  %s402_s6 = int_to_ptr.vmem [resolvable:$true] %s401_s6 }
 0x1f7   :  { %s529_s19 = scalar_lea.vmem %s402_s6, 16  ;;  %s533_s20 = scalar_lea.vmem %s402_s6, 32 }
 0x1f8   :  { %v247_v63 = vmul.f32 %v480_v51, %v246_v58  ;;  %v369_v1 = vrot.slane %v368_v60, 1  ;;  %p530_p2 = scmp.ne.s32.totalorder %s402_s6, %s529_s19  ;;  %p534_p3 = scmp.lt.s32.totalorder %s402_s6, %s402_s6 }
 0x1f9   :  { %p535_p4 = scmp.lt.s32.totalorder %s533_s20, %s529_s19 }
 0x1fa   :  { %v250_v2 = vsel %vm249_vm11, %v247_v63, %v244_v62  ;;  %v370_v5 = vadd.f32 %v369_v1, %v368_v60 }
 0x1fb   :  { %v251_v3 = vadd.f32 %v250_v2, %v237_v0  ;;  %p536_p5 = por %p535_p4, %p534_p3 }
 0x1fd   :  { %v374_v4 = vmul.f32 %v251_v3, %v251_v3  ;;  %p537_p6 = pnand %p536_p5, %p530_p2 }
 0x1ff   :  { %v375_v6 = vadd.f32 %v374_v4, %v370_v5 }
 0x201   :  { %483 = vrsqrt.f32 %v375_v6  ;;  %vm378_vm12 = vcmp.eq.f32.partialorder %v375_v6, inf  ;;  %v381_v9 = vand.u32 2147483648, %v375_v6  ;;  %vm380_vm14 = vcmp.eq.f32.partialorder %v375_v6, 0.0 }
 0x20b   :  { %v484_v7 = vpop.eup %483 }
 0x20c   :  { %v377_v8 = vmul.f32 %v484_v7, %v375_v6 }
 0x20e   :  { %v379_v10 = vsel %vm378_vm12, %v375_v6, %v377_v8 }
 0x20f   :  { %v382_v11 = vsel %vm380_vm14, %v381_v9, %v379_v10 }
 0x210   :  { %384 = vst.msk [vmem:[#allocation6 - $0x1] sm:$0x2] %vm383_vm13, %v382_v11 }
 0x211   :  { %540 = shalt.err (!%p537_p6)
}
 0x212   :  { %s541_s23 = scalar_lea.hbm %s696_s7, 16 }
 0x213   :  { %p542_p7 = scmp.ne.s32.totalorder %s696_s7, %s541_s23  ;;  %p545_p8 = scmp.lt.u32.totalorder %s541_s23, %s696_s7 }
 0x215   :  { %p547_p9 = pnand %p545_p8, %p542_p7 }
 0x217   :  { %550 = shalt.err (!%p547_p9)
}
 0x218   :  { %404 = dma.vmem_to_hbm [thread:$0]  %s402_s6, 16, %s696_s7, [#allocation7]  }
 0x219   :  { %553 = dma.done.wait [#allocation4], 16  }
 0x21a   :  { %554 = vsyncadd [#allocation4], 4294967280 }
 0x21b   :  { %555 = dma.done.wait [#allocation7], 16  }
 0x21c   :  { %556 = vsyncadd [#allocation7], 4294967280 }
 0x21d   :  { %411 = vsyncpa [#allocation3], 1 }
 0x21e   :  { %412 = vsyncpa [#allocation4], 1 }
 0x21f   :  { %413 = vsyncpa [#allocation7], 1 }

</bundles_post_ra>
